<compile_context>
chip_gen: v7x
topology: tpu7x:2x2x1
jax: 0.10.0
libtpu: 0.0.40
codegen_flags: <defaults>
</compile_context>

<pallas_src>
import functools
import math

import jax
import jax.numpy as jnp
from jax.experimental import pallas as pl
from jax.experimental.pallas import tpu as pltpu

EPS = 1e-5


def _layernorm(h, g, b):
    u = jnp.mean(h, axis=-1, keepdims=True)
    s = jnp.mean((h - u) ** 2, axis=-1, keepdims=True)
    return (h - u) * jax.lax.rsqrt(s + EPS) * g + b


def _gelu_exact(x):
    # nn.GELU() default (exact, erf-based)
    return 0.5 * x * (1.0 + jax.lax.erf(x * jnp.float32(0.7071067811865475)))


# --------------------------------------------------------------------------
# Kernel 1: ln_1 + c_attn  (lane-dense (tile, 3D) output)
# --------------------------------------------------------------------------
def ln_qkv_kernel(x_ref, g_ref, b_ref, w_ref, wb_ref, qkv_ref):
    x = x_ref[0]                                   # (ts, D) f32
    h = _layernorm(x, g_ref[0], b_ref[0])
    qkv_ref[0] = jnp.dot(h.astype(w_ref.dtype), w_ref[...],
                         preferred_element_type=jnp.float32) + wb_ref[0]


# --------------------------------------------------------------------------
# Kernel 2: attention (batched over heads) + c_proj + residual + ln_2 + MLP + residual
# --------------------------------------------------------------------------
def attn_mlp_kernel(*refs, has_mask):
    if has_mask:
        (x_ref, q_ref, k_ref, v_ref, bias_ref,
         wproj_ref, bproj_ref, g2_ref, b2_ref,
         wfc_ref, bfc_ref, wout_ref, bout_ref, y_ref) = refs
    else:
        (x_ref, q_ref, k_ref, v_ref,
         wproj_ref, bproj_ref, g2_ref, b2_ref,
         wfc_ref, bfc_ref, wout_ref, bout_ref, y_ref) = refs
        bias_ref = None

    x = x_ref[0]                                   # (tq, D)  f32
    q = q_ref[0]                                   # (H, tq, hd) f32
    k = k_ref[0]                                   # (H, S,  hd) f32
    v = v_ref[0]                                   # (H, S,  hd) f32
    _, _, hd = q.shape
    cdt = wproj_ref.dtype                          # bf16 compute dtype
    scale = jnp.float32(1.0 / math.sqrt(hd))

    # ---- all-heads attention with one batched contraction per matmul ----
    sc = jnp.einsum("hqd,hkd->hqk", q.astype(cdt), k.astype(cdt),
                    preferred_element_type=jnp.float32) * scale      # (H, tq, S)
    if has_mask:
        sc = sc + bias_ref[...]                    # (tq, S) broadcast over heads
    m = jnp.max(sc, axis=-1, keepdims=True)
    p = jnp.exp(sc - m)
    denom = jnp.sum(p, axis=-1, keepdims=True)
    p = p * pl.reciprocal(denom, approx=True)      # softmax, EUP reciprocal
    out = jnp.einsum("hqk,hkd->hqd", p.astype(cdt), v.astype(cdt),
                     preferred_element_type=jnp.float32)             # (H, tq, hd)

    # ---- c_proj as per-head matmul summed over heads (no concat / relayout) ----
    proj = jnp.einsum("hqd,hdD->hqD", out.astype(cdt), wproj_ref[...],
                      preferred_element_type=jnp.float32)            # (H, tq, D)
    attn_out = jnp.sum(proj, axis=0) + bproj_ref[0]                  # (tq, D)
    x1 = x + attn_out

    # ---- ln_2 + MLP (fc -> exact GELU -> proj) + residual ----
    h2 = _layernorm(x1, g2_ref[0], b2_ref[0])
    hf = jnp.dot(h2.astype(cdt), wfc_ref[...],
                 preferred_element_type=jnp.float32) + bfc_ref[0]
    hf = _gelu_exact(hf)
    mlp = jnp.dot(hf.astype(cdt), wout_ref[...],
                  preferred_element_type=jnp.float32) + bout_ref[0]
    y_ref[0] = x1 + mlp


# --------------------------------------------------------------------------
# Wrapper
# --------------------------------------------------------------------------
def gpt2_block(x, params, mask=None, seq_tile=128):
    """Forward of Block.  x: (B, S, D) f32.  Returns (y, present)."""
    B, S, D = x.shape
    H = params["n_head"]
    assert D % H == 0
    hd = D // H
    ts = seq_tile if S % seq_tile == 0 else S      # sequence tile (full S if not divisible)
    bf = jnp.bfloat16

    # bf16 weights, f32 biases / layernorm params.
    wqkv = params["wqkv"].astype(bf)               # (D, 3D)
    wproj_r = params["wproj"].reshape(H, hd, D).astype(bf)  # per-head view of (D, D)
    wfc = params["wfc"].astype(bf)                 # (D, 4D)
    wout = params["wout"].astype(bf)               # (4D, D)

    cparams = pltpu.CompilerParams(
        dimension_semantics=("parallel", "parallel"),
        vmem_limit_bytes=56 * 1024 * 1024)

    def cspec(shape):
        z = (0,) * len(shape)
        return pl.BlockSpec(shape, lambda b, t, _z=z: _z)

    # ---- kernel 1: ln_1 + c_attn (lane-dense qkv) ----
    qkv = pl.pallas_call(
        ln_qkv_kernel,
        out_shape=jax.ShapeDtypeStruct((B, S, 3 * D), jnp.float32),
        grid_spec=pltpu.PrefetchScalarGridSpec(
            num_scalar_prefetch=0,
            grid=(B, S // ts),
            in_specs=[
                pl.BlockSpec((1, ts, D), lambda b, t: (b, t, 0)),    # x
                cspec((1, D)), cspec((1, D)),                        # g1, b1
                cspec((D, 3 * D)), cspec((1, 3 * D)),                # wqkv, bqkv
            ],
            out_specs=pl.BlockSpec((1, ts, 3 * D), lambda b, t: (b, t, 0)),
        ),
        compiler_params=cparams,
    )(x, params["g1"], params["b1"], wqkv, params["bqkv"])

    # Head split / `present` layout is wrapper-side plumbing (lane-dense kernel I/O).
    q, k, v = jnp.split(qkv, 3, axis=-1)
    qh = q.reshape(B, S, H, hd).transpose(0, 2, 1, 3)   # (B, H, S, hd)
    kh = k.reshape(B, S, H, hd).transpose(0, 2, 1, 3)
    vh = v.reshape(B, S, H, hd).transpose(0, 2, 1, 3)
    present = jnp.stack([kh, vh], axis=1)               # (B, 2, H, S, hd)

    has_mask = mask is not None
    in_specs = [
        pl.BlockSpec((1, ts, D), lambda b, t: (b, t, 0)),            # x (residual)
        pl.BlockSpec((1, H, ts, hd), lambda b, t: (b, 0, t, 0)),     # q tile (all heads)
        pl.BlockSpec((1, H, S, hd), lambda b, t: (b, 0, 0, 0)),      # k full seq
        pl.BlockSpec((1, H, S, hd), lambda b, t: (b, 0, 0, 0)),      # v full seq
    ]
    args = [x, qh, kh, vh]
    if has_mask:
        # Single (S, S) additive bias (NOT a (B, H, S, S) tensor).
        bias = jnp.where(jnp.broadcast_to(mask, (S, S)) == 0,
                         jnp.float32(-jnp.inf), jnp.float32(0.0))
        in_specs.append(pl.BlockSpec((ts, S), lambda b, t: (t, 0)))
        args.append(bias)
    in_specs += [
        cspec((H, hd, D)), cspec((1, D)),                            # wproj (per-head), bproj
        cspec((1, D)), cspec((1, D)),                                # g2, b2
        cspec((D, 4 * D)), cspec((1, 4 * D)),                        # wfc, bfc
        cspec((4 * D, D)), cspec((1, D)),                            # wout, bout
    ]
    args += [wproj_r, params["bproj"], params["g2"], params["b2"],
             wfc, params["bfc"], wout, params["bout"]]

    y = pl.pallas_call(
        functools.partial(attn_mlp_kernel, has_mask=has_mask),
        out_shape=jax.ShapeDtypeStruct((B, S, D), jnp.float32),
        grid_spec=pltpu.PrefetchScalarGridSpec(
            num_scalar_prefetch=0,
            grid=(B, S // ts),
            in_specs=in_specs,
            out_specs=pl.BlockSpec((1, ts, D), lambda b, t: (b, t, 0)),
        ),
        compiler_params=cparams,
    )(*args)
    return y, present


# --------------------------------------------------------------------------
# Pure-JAX reference (mirrors the PyTorch forward, do_dropout=False;
# same bf16-matmul / f32-accumulation recipe as the kernel).
# --------------------------------------------------------------------------
def reference_block(x, params, mask=None):
    B, S, D = x.shape
    H = params["n_head"]
    hd = D // H
    bf = jnp.bfloat16

    def mm(a, w):
        return jnp.dot(a.astype(bf), w.astype(bf), preferred_element_type=jnp.float32)

    h = _layernorm(x, params["g1"][0], params["b1"][0])
    qkv = mm(h, params["wqkv"]) + params["bqkv"][0]
    q, k, v = jnp.split(qkv, 3, axis=-1)
    q = q.reshape(B, S, H, hd).transpose(0, 2, 1, 3)
    k = k.reshape(B, S, H, hd).transpose(0, 2, 1, 3)
    v = v.reshape(B, S, H, hd).transpose(0, 2, 1, 3)
    present = jnp.stack([k, v], axis=1)
    sc = jnp.einsum("bhqd,bhkd->bhqk", q.astype(bf), k.astype(bf),
                    preferred_element_type=jnp.float32) * (1.0 / math.sqrt(hd))
    if mask is not None:
        sc = jnp.where(mask == 0, -jnp.inf, sc)
    p = jax.nn.softmax(sc, axis=-1)
    out = jnp.einsum("bhqk,bhkd->bhqd", p.astype(bf), v.astype(bf),
                     preferred_element_type=jnp.float32)
    out = out.transpose(0, 2, 1, 3).reshape(B, S, D)
    out = mm(out, params["wproj"]) + params["bproj"][0]
    x1 = x + out
    h2 = _layernorm(x1, params["g2"][0], params["b2"][0])
    hf = _gelu_exact(mm(h2, params["wfc"]) + params["bfc"][0])
    mlp = mm(hf, params["wout"]) + params["bout"][0]
    return x1 + mlp, present


def init_params(key, n_embd, n_head):
    D = n_embd
    ks = jax.random.split(key, 8)
    f = lambda k, shape: (0.02 * jax.random.normal(k, shape)).astype(jnp.float32)
    return {
        "n_head": n_head,
        "g1": jnp.ones((1, D), jnp.float32),
        "b1": jnp.zeros((1, D), jnp.float32),
        "wqkv": f(ks[0], (D, 3 * D)),
        "bqkv": f(ks[1], (1, 3 * D)),
        "wproj": f(ks[2], (D, D)),
        "bproj": f(ks[3], (1, D)),
        "g2": jnp.ones((1, D), jnp.float32),
        "b2": jnp.zeros((1, D), jnp.float32),
        "wfc": f(ks[4], (D, 4 * D)),
        "bfc": f(ks[5], (1, 4 * D)),
        "wout": f(ks[6], (4 * D, D)),
        "bout": f(ks[7], (1, D)),
    }


if __name__ == "__main__":
    B, S, D, H = 2, 8, 32, 4   # batch, seq, n_embd, n_head (head_dim = 8)
    key = jax.random.PRNGKey(0)
    kx, kp = jax.random.split(key)
    x = jax.random.normal(kx, (B, S, D), dtype=jnp.float32)
    params = init_params(kp, D, H)

    # ---- no mask (past=None, mask=None path) ----
    y, present = gpt2_block(x, params, mask=None)
    y = jax.block_until_ready(y)
    present = jax.block_until_ready(present)
    y_ref, present_ref = reference_block(x, params, mask=None)
    assert y.shape == (B, S, D)
    assert present.shape == (B, 2, H, S, D // H)
    assert jnp.allclose(present, present_ref, atol=1e-3, rtol=1e-3), "present mismatch"
    assert jnp.allclose(y, y_ref, atol=5e-3, rtol=5e-3), "block output mismatch"

    # ---- causal mask path (exercises the additive-bias branch) ----
    causal = jnp.tril(jnp.ones((S, S), dtype=jnp.bool_))
    y_m, present_m = gpt2_block(x, params, mask=causal)
    y_m = jax.block_until_ready(y_m)
    y_m_ref, present_m_ref = reference_block(x, params, mask=causal)
    assert jnp.allclose(present_m, present_m_ref, atol=1e-3, rtol=1e-3), "masked present mismatch"
    assert jnp.allclose(y_m, y_m_ref, atol=5e-3, rtol=5e-3), "masked block output mismatch"

    print("KERNEL_OK")
</pallas_src>

<mosaic_0001>
module attributes {stable_mosaic.version = 11 : i64} {
  func.func @ln_qkv_kernel(%arg0: i32, %arg1: i32, %arg2: memref<1x8x32xf32, #tpu.memory_space<vmem>>, %arg3: memref<1x32xf32, #tpu.memory_space<vmem>>, %arg4: memref<1x32xf32, #tpu.memory_space<vmem>>, %arg5: memref<32x96xbf16, #tpu.memory_space<vmem>>, %arg6: memref<1x96xf32, #tpu.memory_space<vmem>>, %arg7: memref<1x8x96xf32, #tpu.memory_space<vmem>>) attributes {dimension_semantics = [#tpu.dimension_semantics<parallel>, #tpu.dimension_semantics<parallel>], iteration_bounds = array<i64: 2, 1>, scalar_prefetch = 0 : i64, scratch_operands = 0 : i64, tpu.core_type = #tpu.core_type<tc>, window_params = [{transform_indices = @transform_0, window_bounds = array<i64: 1, 8, 32>}, {pipeline_mode = #tpu.pipeline_mode<synchronous>, transform_indices = @transform_1, window_bounds = array<i64: 1, 32>}, {pipeline_mode = #tpu.pipeline_mode<synchronous>, transform_indices = @transform_2, window_bounds = array<i64: 1, 32>}, {pipeline_mode = #tpu.pipeline_mode<synchronous>, transform_indices = @transform_3, window_bounds = array<i64: 32, 96>}, {pipeline_mode = #tpu.pipeline_mode<synchronous>, transform_indices = @transform_4, window_bounds = array<i64: 1, 96>}, {transform_indices = @transform_5, window_bounds = array<i64: 1, 8, 96>}]} {
    %c0 = arith.constant 0 : index
    %c0_0 = arith.constant 0 : index
    %c0_1 = arith.constant 0 : index
    %0 = vector.load %arg2[%c0, %c0_0, %c0_1] : memref<1x8x32xf32, #tpu.memory_space<vmem>>, vector<1x8x32xf32>
    %1 = vector.shape_cast %0 : vector<1x8x32xf32> to vector<8x32xf32>
    %c0_2 = arith.constant 0 : index
    %c0_3 = arith.constant 0 : index
    %2 = vector.load %arg3[%c0_2, %c0_3] : memref<1x32xf32, #tpu.memory_space<vmem>>, vector<1x32xf32>
    %3 = vector.shape_cast %2 : vector<1x32xf32> to vector<32xf32>
    %c0_4 = arith.constant 0 : index
    %c0_5 = arith.constant 0 : index
    %4 = vector.load %arg4[%c0_4, %c0_5] : memref<1x32xf32, #tpu.memory_space<vmem>>, vector<1x32xf32>
    %5 = vector.shape_cast %4 : vector<1x32xf32> to vector<32xf32>
    %cst = arith.constant dense<0.000000e+00> : vector<8xf32>
    %6 = vector.multi_reduction <add>, %1, %cst [1] : vector<8x32xf32> to vector<8xf32>
    %7 = vector.shape_cast %6 : vector<8xf32> to vector<8x1xf32>
    %cst_6 = arith.constant 3.200000e+01 : f32
    %8 = vector.broadcast %cst_6 : f32 to vector<8x1xf32>
    %9 = arith.divf %7, %8 : vector<8x1xf32>
    %10 = vector.broadcast %9 : vector<8x1xf32> to vector<8x32xf32>
    %11 = arith.subf %1, %10 : vector<8x32xf32>
    %12 = arith.mulf %11, %11 : vector<8x32xf32>
    %cst_7 = arith.constant dense<0.000000e+00> : vector<8xf32>
    %13 = vector.multi_reduction <add>, %12, %cst_7 [1] : vector<8x32xf32> to vector<8xf32>
    %14 = vector.shape_cast %13 : vector<8xf32> to vector<8x1xf32>
    %cst_8 = arith.constant 3.200000e+01 : f32
    %15 = vector.broadcast %cst_8 : f32 to vector<8x1xf32>
    %16 = arith.divf %14, %15 : vector<8x1xf32>
    %17 = vector.broadcast %9 : vector<8x1xf32> to vector<8x32xf32>
    %18 = arith.subf %1, %17 : vector<8x32xf32>
    %cst_9 = arith.constant 9.99999974E-6 : f32
    %19 = vector.broadcast %cst_9 : f32 to vector<8x1xf32>
    %20 = arith.addf %16, %19 : vector<8x1xf32>
    %21 = math.rsqrt %20 : vector<8x1xf32>
    %22 = vector.broadcast %21 : vector<8x1xf32> to vector<8x32xf32>
    %23 = arith.mulf %18, %22 : vector<8x32xf32>
    %24 = vector.shape_cast %3 : vector<32xf32> to vector<1x32xf32>
    %25 = vector.broadcast %24 : vector<1x32xf32> to vector<8x32xf32>
    %26 = arith.mulf %23, %25 : vector<8x32xf32>
    %27 = vector.shape_cast %5 : vector<32xf32> to vector<1x32xf32>
    %28 = vector.broadcast %27 : vector<1x32xf32> to vector<8x32xf32>
    %29 = arith.addf %26, %28 : vector<8x32xf32>
    %30 = arith.truncf %29 : vector<8x32xf32> to vector<8x32xbf16>
    %c0_10 = arith.constant 0 : index
    %c0_11 = arith.constant 0 : index
    %31 = vector.load %arg5[%c0_10, %c0_11] : memref<32x96xbf16, #tpu.memory_space<vmem>>, vector<32x96xbf16>
    %cst_12 = arith.constant dense<0.000000e+00> : vector<8x96xf32>
    %32 = tpu.matmul %30, %31, %cst_12 {dimension_numbers = #tpu.dot_dimension_numbers<[1], [0], [0], [1], [0, 0, 1, 1], [], []>} : vector<8x32xbf16>, vector<32x96xbf16>, vector<8x96xf32> -> vector<8x96xf32>
    %c0_13 = arith.constant 0 : index
    %c0_14 = arith.constant 0 : index
    %33 = vector.load %arg6[%c0_13, %c0_14] : memref<1x96xf32, #tpu.memory_space<vmem>>, vector<1x96xf32>
    %34 = vector.shape_cast %33 : vector<1x96xf32> to vector<96xf32>
    %35 = vector.shape_cast %34 : vector<96xf32> to vector<1x96xf32>
    %36 = vector.broadcast %35 : vector<1x96xf32> to vector<8x96xf32>
    %37 = arith.addf %32, %36 : vector<8x96xf32>
    %c0_15 = arith.constant 0 : index
    %c0_16 = arith.constant 0 : index
    %c0_17 = arith.constant 0 : index
    %38 = vector.load %arg7[%c0_15, %c0_16, %c0_17] : memref<1x8x96xf32, #tpu.memory_space<vmem>>, vector<1x8x96xf32>
    %39 = vector.shape_cast %38 : vector<1x8x96xf32> to vector<8x96xf32>
    %40 = vector.shape_cast %37 : vector<8x96xf32> to vector<1x8x96xf32>
    tpu.vector_store %arg7[%c0_15, %c0_16, %c0_17], %40 {strides = array<i32>} : memref<1x8x96xf32, #tpu.memory_space<vmem>>, vector<1x8x96xf32>,
    return
  }
  func.func @transform_0(%arg0: i32, %arg1: i32) -> (i32, i32, i32) {
    %c0_i32 = arith.constant 0 : i32
    %c0_i32_0 = arith.constant 0 : i32
    return %arg0, %arg1, %c0_i32 : i32, i32, i32
  }
  func.func @transform_1(%arg0: i32, %arg1: i32) -> (i32, i32) {
    %c0_i32 = arith.constant 0 : i32
    %c0_i32_0 = arith.constant 0 : i32
    %c0_i32_1 = arith.constant 0 : i32
    return %c0_i32, %c0_i32_0 : i32, i32
  }
  func.func @transform_2(%arg0: i32, %arg1: i32) -> (i32, i32) {
    %c0_i32 = arith.constant 0 : i32
    %c0_i32_0 = arith.constant 0 : i32
    %c0_i32_1 = arith.constant 0 : i32
    return %c0_i32, %c0_i32_0 : i32, i32
  }
  func.func @transform_3(%arg0: i32, %arg1: i32) -> (i32, i32) {
    %c0_i32 = arith.constant 0 : i32
    %c0_i32_0 = arith.constant 0 : i32
    %c0_i32_1 = arith.constant 0 : i32
    return %c0_i32, %c0_i32_0 : i32, i32
  }
  func.func @transform_4(%arg0: i32, %arg1: i32) -> (i32, i32) {
    %c0_i32 = arith.constant 0 : i32
    %c0_i32_0 = arith.constant 0 : i32
    %c0_i32_1 = arith.constant 0 : i32
    return %c0_i32, %c0_i32_0 : i32, i32
  }
  func.func @transform_5(%arg0: i32, %arg1: i32) -> (i32, i32, i32) {
    %c0_i32 = arith.constant 0 : i32
    %c0_i32_0 = arith.constant 0 : i32
    return %arg0, %arg1, %c0_i32 : i32, i32, i32
  }
}

</mosaic_0001>

<bundles_post_ra>
// kernel: tpu_custom_call.1
= control target key start
LH: loop header
LB: loop body
LE: loop exit
PB: predicated region body
PF: predicated region fallthrough
CT: control target
= control target key end

     0   :  { %10 = vsyncpa [#allocation3], 0  ;;  %s1005_s0 = inlined_call_operand.hbm [shape: f32[2,8,32], index: 0, kind: input, shape index: {}]   ;;  %s1006_s1 = inlined_call_operand.vmem [shape: f32[1,32], index: 1, kind: input, shape index: {}]   ;;  %s1007_s2 = inlined_call_operand.vmem [shape: f32[1,32], index: 2, kind: input, shape index: {}]   ;;  %s1008_s3 = inlined_call_operand.hbm [shape: bf16[32,96], index: 3, kind: input, shape index: {}]   ;;  %s1009_s4 = inlined_call_operand.vmem [shape: f32[1,96], index: 4, kind: input, shape index: {}]   ;;  %s1010_s5 = inlined_call_operand.hbm [shape: f32[2,8,96], index: 5, kind: output, shape index: {}]  }
   0x1   :  { %12 = vsyncpa [#allocation3 + $0x1], 0 }
   0x2   :  { %13 = vsyncpa [#allocation6], 0 }
   0x3   :  { %14 = vsyncpa [#allocation4], 0 }
   0x4   :  { %16 = vsyncpa [#allocation4 + $0x1], 0  ;;  %s775_s18 = smov 0   ;;  %s777_s19 = smov 0  }
   0x5   :  { %s779_s20 = smov 0   ;;  %s781_s21 = smov 0  }
   0x6   :  { %s783_s22 = smov 0   ;;  %s785_s23 = smov 0  }
   0x7 LB: > { %s479_s24 = sadd.s32 4294967295, %s736_s23   ;;  %s480_s25 = sadd.s32 4294967294, %s736_s23   ;;  %s736_s23 = sphi %s785_s23, %s22_s23   ;;  %s732_s22 = sphi %s783_s22, %s1034_s22   ;;  %s728_s21 = sphi %s781_s21, %s1033_s21   ;;  %s724_s20 = sphi %s779_s20, %s1032_s20   ;;  %s720_s19 = sphi %s777_s19, %s1031_s19   ;;  %s716_s18 = sphi %s775_s18, %s1030_s18  }
   0x8   : > { %p56_p0 = scmp.ne.s32.totalorder %s720_s19, %s716_s18  ;;  %p809_p1 = scmp.eq.s32.totalorder %s479_s24, 0 }
   0x9   : > { %p813_p2 = scmp.eq.s32.totalorder %s479_s24, 1  ;;  %p172_p3 = scmp.eq.s32.totalorder %s480_s25, 1 }
   0xa   : > { %s1015_s26 = scalar_select %p809_p1, 1, 0 }
   0xb   : > { %s1016_s27 = scalar_select %p813_p2, 1, 0 }
   0xc   : > { %p819_p4 = por %p809_p1, %p56_p0  ;;  %p481_p5 = scmp.ge.s32.totalorder %s736_s23, 1 }
   0xd   : > { %p824_p6 = por %p172_p3, %p56_p0  ;;  %p179_p7 = scmp.lt.s32.totalorder %s736_s23, 3 }
   0xe   : > { %s1017_s28 = scalar_select %p819_p4, 1, 0 }
   0xf   : > { %s1018_s29 = scalar_select %p824_p6, 1, 0 }
  0x10   : > { %p829_p8 = pnand %p481_p5, %p179_p7  ;;  %s738_s6 = smov [#allocation5]  }
  0x11   : > { %s197_s7 = sshll.u32 %s738_s6, 4  ;;  %s34_s9 = sadd.s32 1, %s732_s22  ;;  %s198_s7 = int_to_ptr.vmem [resolvable:$true] %s197_s7 }
  0x12   : > { %s1019_s30 = scalar_select %p829_p8, 1, 0 }
  0x13   : > { %p519_p9 = pneg %p829_p8  ;;  %s592_s12 = scalar_lea.hbm %s1008_s3, 256 }
  0x14   : > { %p593_p12 = scmp.ne.s32.totalorder %s1008_s3, %s592_s12  ;;  %p599_p5 = scmp.lt.u32.totalorder %s592_s12, %s1008_s3 }
  0x15   : > { %p838_p11 = pnand %p519_p9, %p809_p1 }
  0x17   : > { %p594_p13 = pneg %p838_p11 }
  0x19   : > { %p595_p0 = pnand %p594_p13, %p593_p12 }
  0x1b   : > { %p596_p3 = pneg %p595_p0 }
  0x1d   : > { %p601_p7 = pnand %p599_p5, %p596_p3 }
  0x1f   : > { %604 = shalt.err (!%p601_p7)
}
  0x20   : > { %s605_s17 = scalar_lea.vmem %s198_s7, 256  ;;  %p613_p1 = scmp.lt.s32.totalorder %s198_s7, %s198_s7 }
  0x21   : > { %p606_p9 = scmp.ne.s32.totalorder %s198_s7, %s605_s17  ;;  %p614_p4 = scmp.lt.s32.totalorder %s605_s17, %s605_s17 }
  0x23   : > { %p608_p10 = pnand %p606_p9, %p594_p13  ;;  %p615_p8 = por %p614_p4, %p613_p1 }
  0x25   : > { %p609_p6 = pneg %p608_p10 }
  0x27   : > { %p616_p2 = pnand %p615_p8, %p609_p6 }
  0x29   : > { %619 = shalt.err (!%p616_p2)
}
  0x2a   : > { %s739_s24 = smov 64   ;;  %s740_s25 = smov 4  }
  0x2b   : > { %522 = dma.hbm_to_vmem [thread:$0]  (!%p838_p11), %s1008_s3, 256, %s198_s7, [#allocation6], %s739_s24, %s739_s24, %s740_s25  }
  0x2c   : > { %p36_p1 = scmp.ge.s32.totalorder %s34_s9, 2  ;;  %s43_s11 = sadd.s32 1, %s724_s20 }
  0x2d   : > { %p50_p2 = scmp.ne.s32.totalorder %s724_s20, %s720_s19  ;;  %p51_p4 = scmp.eq.s32.totalorder %s736_s23, 0 }
  0x2e   : > { %s1036_s9 = smov (%p36_p1, %s34_s9), 0  ;;  %p1022_p8 = scmp.ne.s32.totalorder %s1016_s27, 0 }
  0x2f   : > { %p865_p6 = por %p51_p4, %p50_p2  ;;  %s38_s8 = ssub.s32 %s732_s22, %s1036_s9 }
  0x30   : > { %p871_p10 = por %p1022_p8, %p50_p2  ;;  %p532_p12 = scmp.lt.s32.totalorder %s736_s23, 2 }
  0x31   : > { %p41_p11 = scmp.eq.s32.totalorder %s38_s8, 0  ;;  %s214_s7 = sand.u32 1, %s724_s20  }
  0x32   : > { %s484_s14 = sshll.u32 %s214_s7, 3  ;;  %s485_s16 = sshll.u32 %s732_s22, 7 }
  0x33   : > { %s880_s15 = scalar_select %p41_p11, %s724_s20, %s43_s11  }
  0x34   : > { %s886_s25 = scalar_lea.hbm %s1005_s0, %s485_s16  ;;  %s218_s27 = scalar_lea.vmem [#allocation2], %s484_s14 }
  0x35   : > { %s226_s6 = sshll.u32 %s218_s27, 4  ;;  %p892_p13 = pnand %p532_p12, %p865_p6  ;;  %s888_s6 = int_to_ptr.vmem [resolvable:$true] %s226_s6 }
  0x36   : > { %s215_s11 = scalar_lea.sflag [#allocation3], %s214_s7  ;;  %s620_s8 = scalar_lea.hbm %s886_s25, 128 }
  0x37   : > { %p621_p0 = scmp.ne.s32.totalorder %s886_s25, %s620_s8  ;;  %p622_p3 = pneg %p892_p13 }
  0x38   : > { %s625_s17 = scalar_lea.hbm %s1005_s0, 256  ;;  %p626_p9 = scmp.lt.u32.totalorder %s886_s25, %s1005_s0 }
  0x39   : > { %p623_p5 = pnand %p622_p3, %p621_p0  ;;  %p627_p1 = scmp.lt.u32.totalorder %s625_s17, %s620_s8 }
  0x3a   : > { %p629_p4 = scmp.lt.u32.totalorder %s620_s8, %s886_s25 }
  0x3b   : > { %p624_p7 = pneg %p623_p5  ;;  %p628_p2 = por %p627_p1, %p626_p9 }
  0x3d   : > { %p630_p6 = por %p629_p4, %p628_p2 }
  0x3f   : > { %p631_p8 = pnand %p630_p6, %p624_p7 }
  0x41   : > { %634 = shalt.err (!%p631_p8)
}
  0x42   : > { %s635_s7 = scalar_lea.vmem %s888_s6, 128  ;;  %s741_s27 = smov [#allocation2]  }
  0x43   : > { %p636_p12 = scmp.ne.s32.totalorder %s888_s6, %s635_s7  ;;  %s640_s14 = sshll.u32 %s741_s27, 4  ;;  %s641_s14 = int_to_ptr.vmem [resolvable:$false] %s640_s14 }
  0x44   : > { %s642_s16 = scalar_lea.vmem %s641_s14, 256  ;;  %p643_p5 = scmp.lt.s32.totalorder %s888_s6, %s641_s14 }
  0x45   : > { %p638_p11 = pnand %p636_p12, %p622_p3  ;;  %p644_p9 = scmp.lt.s32.totalorder %s642_s16, %s635_s7 }
  0x47   : > { %p639_p0 = pneg %p638_p11  ;;  %p645_p1 = por %p644_p9, %p643_p5 }
  0x49   : > { %p646_p2 = pnand %p645_p1, %p639_p0 }
  0x4b   : > { %649 = shalt.err (!%p646_p2)
}
  0x4c   : > { %526 = dma.hbm_to_vmem [thread:$0]  (!%p892_p13), %s886_s25, 128, %s888_s6, %s215_s11  }
  0x4d   : > { %p1025_p7 = scmp.ne.s32.totalorder %s1019_s30, 0 }
  0x4e   : > { %s924_s8 = sand.u32 (!%p1025_p7), 1, %s720_s19   ;;  %p1026_p3 = scmp.ne.s32.totalorder (!%p1025_p7), %s1017_s28, 0 }
  0x4f   : > { %235 = sbr.rel (%p1025_p7) target bundleno = 634 (0x27a), region = 40  ;;  %s487_s17 = sshll.u32 (!%p1025_p7), %s924_s8, 3 }
  0x50   : > { %s238_s12 = scalar_lea.sflag (!%p1025_p7), [#allocation3], %s924_s8  ;;  %s241_s24 = scalar_lea.vmem (!%p1025_p7), [#allocation2], %s487_s17 }
  0x56   : > { %703 = dma.done.wait (%p1026_p3), %s238_s12, 128  }
  0x57   : > { %705 = vsyncadd (%p1026_p3), %s238_s12, 4294967168  ;;  %p1027_p13 = scmp.ne.s32.totalorder %s1015_s26, 0 }
  0x59   : > { %707 = dma.done.wait (%p1027_p13), [#allocation6], 256  }
  0x5a   : > { %709 = vsyncadd (%p1027_p13), [#allocation6], 4294967040  ;;  %vm276_vm0 = vcmask 261120   ;;  %v273_v0 = vld [vmem:[%s241_s24] sm:$0xff]  ;;  %v588_v7 = vld [vmem:[#allocation5] sm:$0xff]   ;;  %v742_v8 = vmov 0.0  }
  0x5b   : > { %v277_v1 = vsel %vm276_vm0, %v273_v0, 0.0  ;;  %503 = vmatprep.subr.bf16.mxu0 %v742_v8  ;;  %v589_v9 = vld [vmem:[#allocation5 + $0x8] sm:$0xff]   ;;  %vm743_vm1 = vmmov 0   ;;  %v490_v14 = vld [vmem:[%s1006_s1] ss:$0 sm:$0xff]  ;;  %s497_s11 = sshll.u32 %s728_s21, 7 }
  0x5c   : > { %278 = vadd.xlane.f32.xlu0 %v277_v1  ;;  %504 = vmatpush3.bf16.msra.mxu0 %v588_v7  ;;  %v491_v16 = vld [vmem:[%s1007_s2] ss:$0 sm:$0xff]  ;;  %s271_s7 = scalar_lea.vmem [#allocation7], %s487_s17  ;;  %vm372_vm2 = vcmask 785408   ;;  %s956_s12 = scalar_lea.hbm %s1010_s5, %s497_s11 }
  0x5d   : > { %507 = vmatprep.mubr.msk.bf16.mxu0 %vm743_vm1, %v742_v8  ;;  %505 = vmatprep.subr.bf16.mxu0 %v742_v8  ;;  %v492_v20 = vld [vmem:[%s1009_s4] ss:$0 sm:$0xff]  ;;  %s389_s27 = sshll.u32 %s271_s7, 4  ;;  %s375_s21 = scalar_lea.sflag [#allocation4], %s924_s8  ;;  %s958_s27 = int_to_ptr.vmem [resolvable:$true] %s389_s27 }
  0x5e   : > { %s650_s17 = scalar_lea.vmem %s958_s27, 128  ;;  %s744_s24 = smov [#allocation7]  }
  0x5f   : > { %p651_p4 = scmp.ne.s32.totalorder %s958_s27, %s650_s17  ;;  %s654_s26 = sshll.u32 %s744_s24, 4  ;;  %s655_s26 = int_to_ptr.vmem [resolvable:$false] %s654_s26 }
  0x60   : > { %506 = vmatpush3.bf16.msra.mxu0 %v589_v9  ;;  %s656_s28 = scalar_lea.vmem %s655_s26, 256  ;;  %p657_p12 = scmp.lt.s32.totalorder %s958_s27, %s655_s26 }
  0x61   : > { %p652_p6 = pnand %p651_p4, %p871_p10  ;;  %p658_p11 = scmp.lt.s32.totalorder %s656_s28, %s650_s17 }
  0x63   : > { %p653_p8 = pneg %p652_p6  ;;  %p659_p0 = por %p658_p11, %p657_p12 }
  0x65   : > { %p660_p5 = pnand %p659_p0, %p653_p8 }
  0xe9   : > { %v279_v2 = vpop.xlane.xlu0 %278 }
  0xea   : > { %v281_v3 = vmul.f32 0.03125, %v279_v2 }
  0xec   : > { %v282_v4 = vsub.f32 %v273_v0, %v281_v3 }
  0xee   : > { %v283_v5 = vmul.f32 %v282_v4, %v282_v4 }
  0xf0   : > { %v284_v6 = vsel %vm276_vm0, %v283_v5, 0.0 }
  0xf1   : > { %285 = vadd.xlane.f32.xlu0 %v284_v6 }
 0x17e   : > { %v286_v10 = vpop.xlane.xlu0 %285 }
 0x17f   : > { %v287_v11 = vmul.f32 0.03125, %v286_v10 }
 0x181   : > { %v288_v12 = vadd.f32 1e-05, %v287_v11 }
 0x183   : > { %590 = vrsqrt.f32 %v288_v12 }
 0x18d   : > { %v591_v13 = vpop.eup %590 }
 0x18e   : > { %v290_v15 = vmul.f32 %v591_v13, %v282_v4 }
 0x190   : > { %v297_v17 = vmul.f32 %v490_v14, %v290_v15 }
 0x192   : > { %v304_v18 = vadd.f32 %v491_v16, %v297_v17 }
 0x194   : > { %v305_v19 = vpack.c.bf16 %v304_v18, %v304_v18 }
 0x196   : > { %508 = vmatmul.mubr.msk.bf16.vlgmr.msra.gmra.mrb[0].mxu0 %vm276_vm0, %v305_v19 }
 0x269   : > { %v366_v21 = vpop.f32.mrb[0].mxu0 }
 0x26a   : > { %v367_v22 = vadd.f32 %v492_v20, %v366_v21  ;;  %v509_v23 = vpop.f32.mrb[1].mxu0 }
 0x26b   : > { %v369_v24 = vpop.f32.mrb[2].mxu0 }
 0x26c   : > { %v510_v25 = vpop.f32.mrb[3].mxu0  ;;  %373 = vst.msk [vmem:[%s271_s7] sm:$0xff] %vm372_vm2, %v367_v22 }
 0x26d   : > { %663 = shalt.err (!%p660_p5)
}
 0x26e   : > { %s664_s8 = scalar_lea.hbm %s956_s12, 128  ;;  %s668_s6 = scalar_lea.hbm %s1010_s5, 256 }
 0x26f   : > { %p665_p9 = scmp.ne.s32.totalorder %s956_s12, %s664_s8  ;;  %p669_p7 = scmp.lt.u32.totalorder %s956_s12, %s1010_s5 }
 0x270   : > { %p670_p3 = scmp.lt.u32.totalorder %s668_s6, %s664_s8  ;;  %p672_p4 = scmp.lt.u32.totalorder %s664_s8, %s956_s12 }
 0x271   : > { %p666_p1 = pnand %p665_p9, %p871_p10 }
 0x272   : > { %p671_p13 = por %p670_p3, %p669_p7 }
 0x273   : > { %p667_p2 = pneg %p666_p1 }
 0x274   : > { %p673_p6 = por %p672_p4, %p671_p13 }
 0x276   : > { %p674_p8 = pnand %p673_p6, %p667_p2 }
 0x278   : > { %677 = shalt.err (!%p674_p8)
}
 0x279   : > { %517 = dma.vmem_to_hbm [thread:$0]  (%p871_p10), %s958_s27, 128, %s956_s12, %s375_s21  }
 0x27a PF: > { %s401_s7 = sand.u32 1, %s716_s18   ;;  %p1028_p12 = scmp.ne.s32.totalorder %s1018_s29, 0 }
 0x27b   : > { %p1029_p11 = scmp.ge.s32.totalorder %s736_s23, 2  ;;  %s402_s14 = scalar_lea.sflag [#allocation4], %s401_s7 }
 0x27d   : > { %p528_p0 = pnand %p1029_p11, %p1028_p12 }
 0x27f   : > { %711 = dma.done.wait (!%p528_p0), %s402_s14, 128  }
 0x280   : > { %713 = vsyncadd (!%p528_p0), %s402_s14, 4294967168  ;;  %s22_s23 = sadd.s32 1, %s736_s23   ;;  %s1030_s18 = smov %s720_s19 }
 0x281   : > { %p19_p5 = scmp.ge.s32.totalorder %s22_s23, 4   ;;  %s1031_s19 = smov %s724_s20 }
 0x282   : > { %s1032_s20 = smov %s880_s15  ;;  %s1033_s21 = smov %s732_s22 }
 0x283   : > { %s1034_s22 = smov %s1036_s9  ;;  %21 = sbr.rel (!%p19_p5) target bundleno = 7 (0x7), region = 89 }
 0x28a   :  { %407 = vsyncpa [#allocation3], 1 }
 0x28b   :  { %409 = vsyncpa [#allocation3 + $0x1], 1 }
 0x28c   :  { %410 = vsyncpa [#allocation6], 1 }
 0x28d   :  { %411 = vsyncpa [#allocation4], 1 }
 0x28e   :  { %413 = vsyncpa [#allocation4 + $0x1], 1 }

</bundles_post_ra>
